<compile_context>
chip_gen: v7x
topology: tpu7x:2x2x1
jax: 0.10.0
libtpu: 0.0.40
codegen_flags: <defaults>
</compile_context>

<pallas_src>
import jax
import jax.numpy as jnp
from jax.experimental import pallas as pl
from jax.experimental.pallas import tpu as pltpu


def _round_up(x, m):
    return ((x + m - 1) // m) * m


def _conv_seg_kernel(x_ref, w_ref, b_ref, o_ref):
    # x_ref: (1, C, T)   activation tile, channels-major (direct NCHW view), bf16
    # w_ref: (K, C)      1x1 conv weight, VMEM-resident across the grid, bf16
    # b_ref: (K, 1)      bias, f32
    # o_ref: (1, K, T)   logits tile, lane dim = T (lane-dense), f32
    acc = jnp.dot(w_ref[...], x_ref[0], preferred_element_type=jnp.float32)  # (K, T)
    o_ref[0] = (acc + b_ref[...]).astype(o_ref.dtype)


def conv_seg_pallas(x_nchw, weight, bias, *, tile_hw=512,
                    compute_dtype=jnp.bfloat16, out_dtype=jnp.float32):
    """1x1 conv (conv_seg) as a Pallas kernel, computed directly on NCHW.

    x_nchw : (N, C, H, W)
    weight : (K, C, 1, 1)  (PyTorch Conv2d layout)
    bias   : (K,)
    returns: (N, K, H, W) out_dtype
    """
    N, C, H, W = x_nchw.shape
    K = weight.shape[0]
    HW = H * W

    # Pixel tile: multiple of 128 lanes, no bigger than the (128-rounded) pixel count.
    tile = _round_up(min(tile_hw, _round_up(HW, 128)), 128)
    hw_pad = _round_up(HW, tile)
    n_tiles = hw_pad // tile

    # Free reshape (no transpose); pad the pixel axis if needed so every tile is full.
    x_flat = x_nchw.reshape(N, C, HW).astype(compute_dtype)
    if hw_pad != HW:
        x_flat = jnp.pad(x_flat, ((0, 0), (0, 0), (0, hw_pad - HW)))

    w_kc = weight.reshape(K, C).astype(compute_dtype)      # (K, C)
    b_k1 = bias.reshape(K, 1).astype(jnp.float32)          # (K, 1)

    bytes_accessed = (N * C * hw_pad * x_flat.dtype.itemsize
                      + K * C * w_kc.dtype.itemsize
                      + K * 4
                      + N * K * hw_pad * jnp.dtype(out_dtype).itemsize)

    out = pl.pallas_call(
        _conv_seg_kernel,
        out_shape=jax.ShapeDtypeStruct((N, K, hw_pad), out_dtype),
        grid_spec=pl.GridSpec(
            grid=(N, n_tiles),
            in_specs=[
                pl.BlockSpec((1, C, tile), lambda n, j: (n, 0, j)),
                pl.BlockSpec((K, C), lambda n, j: (0, 0)),   # resident
                pl.BlockSpec((K, 1), lambda n, j: (0, 0)),   # resident
            ],
            out_specs=pl.BlockSpec((1, K, tile), lambda n, j: (n, 0, j)),
        ),
        compiler_params=pltpu.CompilerParams(
            dimension_semantics=("parallel", "parallel"),
            vmem_limit_bytes=48 * 1024 * 1024,
        ),
        cost_estimate=pl.CostEstimate(
            flops=2 * N * hw_pad * C * K,
            transcendentals=0,
            bytes_accessed=bytes_accessed,
        ),
    )(x_flat, w_kc, b_k1)

    if hw_pad != HW:
        out = out[:, :, :HW]
    return out.reshape(N, K, H, W)


class BaseDecodeHeadPallas:
    """Minimal JAX/Pallas port of mmseg BaseDecodeHead (inference path).

    Only the concrete pieces of the abstract base class are implemented:
    input selection (`_transform_inputs` with input_transform=None) and
    `cls_seg` (dropout -> conv_seg). Loss / sampler / training machinery is
    out of scope for a forward kernel.
    """

    def __init__(self, in_channels, channels, *, num_classes,
                 dropout_ratio=0.1, in_index=-1, input_transform=None,
                 align_corners=False, seed=0):
        assert input_transform is None, "only input_transform=None supported here"
        assert isinstance(in_channels, int) and isinstance(in_index, int)
        self.in_channels = in_channels
        self.channels = channels
        self.num_classes = num_classes
        self.dropout_ratio = dropout_ratio
        self.in_index = in_index
        self.align_corners = align_corners

        # conv_seg = nn.Conv2d(channels, num_classes, kernel_size=1)
        # init_weights(): normal_init(mean=0, std=0.01), bias=0
        key = jax.random.PRNGKey(seed)
        self.conv_seg_weight = 0.01 * jax.random.normal(
            key, (num_classes, channels, 1, 1), dtype=jnp.float32)
        self.conv_seg_bias = jnp.zeros((num_classes,), dtype=jnp.float32)

    def _transform_inputs(self, inputs):
        # input_transform=None: select single feature map by index.
        return inputs[self.in_index]

    def cls_seg(self, feat):
        # Dropout2d is identity at inference time.
        # TODO(synk): training-mode Dropout2d (channel-wise Bernoulli mask) not implemented.
        return conv_seg_pallas(feat, self.conv_seg_weight, self.conv_seg_bias)

    def forward(self, inputs):
        # forward() is abstract in the base class; the minimal concrete
        # behaviour shared by subclasses is: transform inputs -> cls_seg.
        x = self._transform_inputs(inputs)
        return self.cls_seg(x)


def _reference_conv_seg(feat, weight, bias, compute_dtype=jnp.bfloat16):
    # Plain-JAX reference with the same bf16 operand rounding as the kernel.
    K, C = weight.shape[0], weight.shape[1]
    xb = feat.astype(compute_dtype).astype(jnp.float32)
    wb = weight.reshape(K, C).astype(compute_dtype).astype(jnp.float32)
    return jnp.einsum("nchw,kc->nkhw", xb, wb) + bias.reshape(1, K, 1, 1)


if __name__ == "__main__":
    key = jax.random.PRNGKey(0)
    N, C, H, W = 2, 4, 16, 16
    num_classes = 8

    k1, k2 = jax.random.split(key)
    # List of multi-level features; in_index=-1 selects the last, which has
    # `channels` channels (feat fed to cls_seg must have `channels` channels).
    feat0 = jax.random.normal(k1, (N, C, H, W), dtype=jnp.float32)
    feat1 = jax.random.normal(k2, (N, C, H, W), dtype=jnp.float32)
    inputs = [feat0, feat1]

    head = BaseDecodeHeadPallas(in_channels=C, channels=C,
                                num_classes=num_classes, in_index=-1)

    out = head.forward(inputs)
    out = jax.block_until_ready(out)

    ref = _reference_conv_seg(feat1, head.conv_seg_weight, head.conv_seg_bias)
    assert out.shape == (N, num_classes, H, W)
    assert jnp.allclose(out, ref, atol=1e-3, rtol=1e-3)

    # Also exercise the non-divisible pixel-count (padding) path: H = W = 13.
    feat_odd = jax.random.normal(k1, (N, C, 13, 13), dtype=jnp.float32)
    out_odd = jax.block_until_ready(
        conv_seg_pallas(feat_odd, head.conv_seg_weight, head.conv_seg_bias))
    ref_odd = _reference_conv_seg(feat_odd, head.conv_seg_weight, head.conv_seg_bias)
    assert out_odd.shape == (N, num_classes, 13, 13)
    assert jnp.allclose(out_odd, ref_odd, atol=1e-3, rtol=1e-3)

    print("KERNEL_OK")
</pallas_src>

<mosaic_0001>
module attributes {stable_mosaic.version = 11 : i64} {
  func.func @_conv_seg_kernel(%arg0: i32, %arg1: i32, %arg2: memref<1x4x256xbf16, #tpu.memory_space<vmem>>, %arg3: memref<8x4xbf16, #tpu.memory_space<vmem>>, %arg4: memref<8x1xf32, #tpu.memory_space<vmem>>, %arg5: memref<1x8x256xf32, #tpu.memory_space<vmem>>) attributes {dimension_semantics = [#tpu.dimension_semantics<parallel>, #tpu.dimension_semantics<parallel>], iteration_bounds = array<i64: 2, 1>, scalar_prefetch = 0 : i64, scratch_operands = 0 : i64, tpu.core_type = #tpu.core_type<tc>, window_params = [{transform_indices = @transform_0, window_bounds = array<i64: 1, 4, 256>}, {pipeline_mode = #tpu.pipeline_mode<synchronous>, transform_indices = @transform_1, window_bounds = array<i64: 8, 4>}, {pipeline_mode = #tpu.pipeline_mode<synchronous>, transform_indices = @transform_2, window_bounds = array<i64: 8, 1>}, {transform_indices = @transform_3, window_bounds = array<i64: 1, 8, 256>}]} {
    %c0 = arith.constant 0 : index
    %c0_0 = arith.constant 0 : index
    %0 = vector.load %arg3[%c0, %c0_0] : memref<8x4xbf16, #tpu.memory_space<vmem>>, vector<8x4xbf16>
    %c0_1 = arith.constant 0 : index
    %c0_2 = arith.constant 0 : index
    %c0_3 = arith.constant 0 : index
    %1 = vector.load %arg2[%c0_1, %c0_2, %c0_3] : memref<1x4x256xbf16, #tpu.memory_space<vmem>>, vector<1x4x256xbf16>
    %2 = vector.shape_cast %1 : vector<1x4x256xbf16> to vector<4x256xbf16>
    %cst = arith.constant dense<0.000000e+00> : vector<8x256xf32>
    %3 = tpu.matmul %0, %2, %cst {dimension_numbers = #tpu.dot_dimension_numbers<[1], [0], [0], [1], [0, 0, 1, 1], [], []>} : vector<8x4xbf16>, vector<4x256xbf16>, vector<8x256xf32> -> vector<8x256xf32>
    %c0_4 = arith.constant 0 : index
    %c0_5 = arith.constant 0 : index
    %4 = vector.load %arg4[%c0_4, %c0_5] : memref<8x1xf32, #tpu.memory_space<vmem>>, vector<8x1xf32>
    %5 = vector.broadcast %4 : vector<8x1xf32> to vector<8x256xf32>
    %6 = arith.addf %3, %5 : vector<8x256xf32>
    %c0_6 = arith.constant 0 : index
    %c0_7 = arith.constant 0 : index
    %c0_8 = arith.constant 0 : index
    %7 = vector.load %arg5[%c0_6, %c0_7, %c0_8] : memref<1x8x256xf32, #tpu.memory_space<vmem>>, vector<1x8x256xf32>
    %8 = vector.shape_cast %7 : vector<1x8x256xf32> to vector<8x256xf32>
    %9 = vector.shape_cast %6 : vector<8x256xf32> to vector<1x8x256xf32>
    tpu.vector_store %arg5[%c0_6, %c0_7, %c0_8], %9 {strides = array<i32>} : memref<1x8x256xf32, #tpu.memory_space<vmem>>, vector<1x8x256xf32>,
    return
  }
  func.func @transform_0(%arg0: i32, %arg1: i32) -> (i32, i32, i32) {
    %c0_i32 = arith.constant 0 : i32
    %c0_i32_0 = arith.constant 0 : i32
    return %arg0, %c0_i32, %arg1 : i32, i32, i32
  }
  func.func @transform_1(%arg0: i32, %arg1: i32) -> (i32, i32) {
    %c0_i32 = arith.constant 0 : i32
    %c0_i32_0 = arith.constant 0 : i32
    %c0_i32_1 = arith.constant 0 : i32
    return %c0_i32, %c0_i32_0 : i32, i32
  }
  func.func @transform_2(%arg0: i32, %arg1: i32) -> (i32, i32) {
    %c0_i32 = arith.constant 0 : i32
    %c0_i32_0 = arith.constant 0 : i32
    %c0_i32_1 = arith.constant 0 : i32
    return %c0_i32, %c0_i32_0 : i32, i32
  }
  func.func @transform_3(%arg0: i32, %arg1: i32) -> (i32, i32, i32) {
    %c0_i32 = arith.constant 0 : i32
    %c0_i32_0 = arith.constant 0 : i32
    return %arg0, %c0_i32, %arg1 : i32, i32, i32
  }
}

</mosaic_0001>

<bundles_post_ra>
// kernel: tpu_custom_call.1
= control target key start
LH: loop header
LB: loop body
LE: loop exit
PB: predicated region body
PF: predicated region fallthrough
CT: control target
= control target key end

     0   :  { %8 = vsyncpa [#allocation3], 0  ;;  %s660_s0 = inlined_call_operand.vmem [shape: bf16[2,4,256], index: 0, kind: input, shape index: {}]   ;;  %s661_s1 = inlined_call_operand.vmem [shape: bf16[8,4], index: 1, kind: input, shape index: {}]   ;;  %s662_s2 = inlined_call_operand.vmem [shape: f32[8,1], index: 2, kind: input, shape index: {}]   ;;  %s663_s3 = inlined_call_operand.hbm [shape: f32[2,8,256], index: 3, kind: output, shape index: {}]  }
   0x1   :  { %10 = vsyncpa [#allocation3 + $0x1], 0  ;;  %s542_s12 = smov 0   ;;  %s544_s13 = smov 0  }
   0x2   :  { %s546_s14 = smov 0   ;;  %s548_s15 = smov 0  }
   0x3   :  { %s550_s16 = smov 0   ;;  %s552_s17 = smov 0  }
   0x4 LB: > { %s365_s18 = sadd.s32 4294967295, %s518_s17   ;;  %s366_s19 = sadd.s32 4294967294, %s518_s17   ;;  %s518_s17 = sphi %s552_s17, %s16_s17   ;;  %s514_s16 = sphi %s550_s16, %s670_s16   ;;  %s510_s15 = sphi %s548_s15, %s669_s15   ;;  %s506_s14 = sphi %s546_s14, %s668_s14   ;;  %s502_s13 = sphi %s544_s13, %s667_s13   ;;  %s498_s12 = sphi %s542_s12, %s666_s12  }
   0x5   : > { %s28_s20 = sadd.s32 1, %s514_s16  ;;  %s107_s21 = sadd.s32 1, %s506_s14 }
   0x6   : > { %p30_p0 = scmp.ge.s32.totalorder %s28_s20, 2  ;;  %p117_p1 = scmp.ne.s32.totalorder %s506_s14, %s502_s13 }
   0x7   : > { %p118_p2 = scmp.eq.s32.totalorder %s365_s18, 1  ;;  %p123_p3 = scmp.ne.s32.totalorder %s502_s13, %s498_s12 }
   0x8   : > { %s672_s20 = smov (%p30_p0, %s28_s20), 0  ;;  %p124_p5 = scmp.eq.s32.totalorder %s366_s19, 1 }
   0x9   : > { %p582_p4 = por %p118_p2, %p117_p1  ;;  %s102_s23 = ssub.s32 %s514_s16, %s672_s20 }
   0xa   : > { %p369_p6 = scmp.ge.s32.totalorder %s518_s17, 1  ;;  %p105_p7 = scmp.eq.s32.totalorder %s102_s23, 0 }
   0xb   : > { %p589_p8 = por %p124_p5, %p123_p3  ;;  %p161_p9 = scmp.lt.s32.totalorder %s518_s17, 3 }
   0xc   : > { %s595_s25 = scalar_select %p105_p7, %s506_s14, %s107_s21  }
   0xd   : > { %p162_p10 = pnand %p369_p6, %p161_p9 }
   0xe   : > { %p190_p11 = scmp.lt.s32.totalorder (!%p162_p10), %s510_s15, 1  ;;  %v520_v0 = vmov (!%p162_p10), 0   ;;  %v203_v1 = vld [vmem:[%s662_s2] sm:$0xff] (!%p162_p10)  ;;  %vm222_vm0 = vcmask (!%p162_p10), 1041408   ;;  %vm218_vm1 = vcmask (!%p162_p10), 31744   ;;  %s186_s8 = sand.u32 (!%p162_p10), 1, %s502_s13  }
   0xf   : > { %165 = sbr.rel (%p162_p10) target bundleno = 262 (0x106), region = 32  ;;  %261 = vmatprep.mubr.bf16.mxu0 (!%p162_p10), %v520_v0  ;;  %439 = vset.pattern.permute.xlu0 (!%p162_p10), %v520_v0  ;;  %v201_v5 = vld [vmem:[%s661_s1] sm:$0xf] (!%p162_p10)  ;;  %s370_s9 = sshll.u32 (!%p162_p10), %s186_s8, 4 }
  0x10   : > { %206 = vperm.xlu0 (!%p162_p10), %439, %v203_v1   ;;  %s382_s10 = sshll.u32 (!%p162_p10), %s510_s15, 8  ;;  %s188_s11 = scalar_lea.vmem (!%p162_p10), [#allocation2], %s370_s9 }
  0x11   : > { %s289_s18 = sshll.u32 (!%p162_p10), %s188_s11, 4  ;;  %s613_s23 = scalar_lea.hbm (!%p162_p10), %s663_s3, %s382_s10  ;;  %s615_s18 = int_to_ptr.vmem [resolvable:$true] %s289_s18 }
  0x12   : > { %s440_s26 = scalar_lea.vmem (!%p162_p10), %s615_s18, 256  ;;  %s521_s27 = smov (!%p162_p10), [#allocation2]  }
  0x13   : > { %p441_p12 = scmp.ne.s32.totalorder (!%p162_p10), %s615_s18, %s440_s26 }
  0x15   : > { %p442_p13 = pnand (!%p162_p10), %p441_p12, %p582_p4 }
  0x16   : > { %s191_s28 = scalar_select %p190_p11, %s510_s15, 1 }
  0x17   : > { %s273_s15 = scalar_lea.sflag [#allocation3], %s186_s8  ;;  %p443_p0 = pneg %p442_p13 }
  0x18   : > { %s381_s29 = sshll.u32 %s191_s28, 2  ;;  %s444_s28 = sshll.u32 %s521_s27, 4  ;;  %s445_s28 = int_to_ptr.vmem [resolvable:$false] %s444_s28 }
  0x19   : > { %s197_s5 = scalar_lea.vmem %s660_s0, %s381_s29  ;;  %s446_s29 = scalar_lea.vmem %s445_s28, 512 }
  0x1a   : > { %v373_v2 = vld.sshfl [vmem:[%s197_s5] sm:$0x33 pattern:$0x76325410]  ;;  %p447_p1 = scmp.lt.s32.totalorder %s615_s18, %s445_s28  ;;  %p448_p2 = scmp.lt.s32.totalorder %s446_s29, %s440_s26 }
  0x1b   : > { %v217_v3 = vcombine.high %v373_v2, %v373_v2  ;;  %v224_v4 = vsel %vm222_vm0, %v373_v2, 0 }
  0x1c   : > { %p449_p3 = por %p448_p2, %p447_p1 }
  0x1d   : > { %374 = vmatprep.subr.msk.bf16.mxu0 %vm222_vm0, %v217_v3 }
  0x1e   : > { %230 = vmatpush1.bf16.msra.mxu0 %v224_v4  ;;  %p450_p5 = pnand %p449_p3, %p443_p0 }
  0x21   : > { %375 = vmatmul.mubr.msk.bf16.vlgmr.msra.gmra.mrb[0].mxu0 %vm218_vm1, %v201_v5 }
  0x8f   : > { %v207_v6 = vpop.permute.xlu0 %206 }
  0xf4   : > { %v263_v7 = vpop.f32.mrb[0].mxu0 }
  0xf5   : > { %v264_v8 = vadd.f32 %v263_v7, %v207_v6  ;;  %v265_v9 = vpop.f32.mrb[1].mxu0 }
  0xf6   : > { %v266_v10 = vadd.f32 %v265_v9, %v207_v6  ;;  %v267_v11 = vpop.f32.mrb[2].mxu0 }
  0xf7   : > { %270 = vst [vmem:[%s188_s11] sm:$0xff] %v264_v8  ;;  %v268_v12 = vpop.f32.mrb[3].mxu0 }
  0xf8   : > { %271 = vst [vmem:[%s188_s11 + $0x8] sm:$0xff] %v266_v10 }
  0xf9   : > { %453 = shalt.err (!%p450_p5)
}
  0xfa   : > { %s454_s30 = scalar_lea.hbm %s613_s23, 256  ;;  %s458_s6 = scalar_lea.hbm %s663_s3, 512 }
  0xfb   : > { %p455_p6 = scmp.ne.s32.totalorder %s613_s23, %s454_s30  ;;  %p459_p10 = scmp.lt.u32.totalorder %s613_s23, %s663_s3 }
  0xfc   : > { %p460_p11 = scmp.lt.u32.totalorder %s458_s6, %s454_s30  ;;  %p462_p13 = scmp.lt.u32.totalorder %s454_s30, %s613_s23 }
  0xfd   : > { %p456_p7 = pnand %p455_p6, %p582_p4 }
  0xfe   : > { %p461_p12 = por %p460_p11, %p459_p10 }
  0xff   : > { %p457_p9 = pneg %p456_p7 }
 0x100   : > { %p463_p0 = por %p462_p13, %p461_p12 }
 0x102   : > { %p464_p1 = pnand %p463_p0, %p457_p9 }
 0x104   : > { %467 = shalt.err (!%p464_p1)
}
 0x105   : > { %383 = dma.vmem_to_hbm [thread:$0]  (%p582_p4), %s615_s18, 256, %s613_s23, %s273_s15  }
 0x106 PF: > { %p389_p2 = scmp.ge.s32.totalorder %s518_s17, 2  ;;  %s301_s9 = sand.u32 1, %s498_s12  }
 0x107   : > { %s302_s10 = scalar_lea.sflag [#allocation3], %s301_s9 }
 0x108   : > { %p386_p3 = pnand %p389_p2, %p589_p8 }
 0x10a   : > { %493 = dma.done.wait (!%p386_p3), %s302_s10, 256  }
 0x10b   : > { %495 = vsyncadd (!%p386_p3), %s302_s10, 4294967040  ;;  %s16_s17 = sadd.s32 1, %s518_s17   ;;  %s666_s12 = smov %s502_s13 }
 0x10c   : > { %p13_p5 = scmp.ge.s32.totalorder %s16_s17, 4   ;;  %s667_s13 = smov %s506_s14 }
 0x10d   : > { %s668_s14 = smov %s595_s25  ;;  %s669_s15 = smov %s514_s16 }
 0x10e   : > { %s670_s16 = smov %s672_s20  ;;  %15 = sbr.rel (!%p13_p5) target bundleno = 4 (0x4), region = 67 }
 0x115   :  { %307 = vsyncpa [#allocation3], 1 }
 0x116   :  { %309 = vsyncpa [#allocation3 + $0x1], 1 }

</bundles_post_ra>
